<compile_context>
chip_gen: v7x
topology: tpu7x:2x2x1
jax: 0.10.0
libtpu: 0.0.40
codegen_flags: <defaults>
</compile_context>

<pallas_src>
import math
from functools import partial

import jax
import jax.numpy as jnp
from jax.experimental import pallas as pl
from jax.experimental.pallas import tpu as pltpu


def _get_pad(size, multiple):
    new_size = math.ceil(size / multiple) * multiple
    pad_size = new_size - size
    left = pad_size // 2
    return left, pad_size - left


def _round_up(a, b):
    return ((a + b - 1) // b) * b


def _vmem_capacity_bytes():
    try:
        cap = int(pltpu.get_tpu_info().vmem_capacity_bytes)
        if cap > 0:
            return cap
    except Exception:
        pass
    return 64 << 20  # conservative: v7x per-TensorCore VMEM


def _center_pad_flat_kernel(x_ref, o_ref, *, H, W, W_out, pad_top, pad_left):
    """x_ref: (tc, H*W), o_ref: (tc, H_out*W_out); both lane-dense."""
    # One lane-dense zero store over the whole tile (mostly unmasked vst),
    # then overwrite the interior exactly once.
    o_ref[...] = jnp.zeros(o_ref.shape, o_ref.dtype)
    if W_out == W:
        # Only H is padded: the interior is one contiguous lane range.
        o_ref[:, pl.ds(pad_top * W_out, H * W)] = x_ref[...]
    else:
        for h in range(H):
            dst = (pad_top + h) * W_out + pad_left
            src = h * W
            o_ref[:, pl.ds(dst, W)] = x_ref[:, pl.ds(src, W)]


def center_padding(x, multiple=14):
    """Pallas equivalent of CenterPadding(multiple).forward(x) for NCHW input."""
    N, C, H, W = x.shape
    pad_top, pad_bot = _get_pad(H, multiple)
    pad_left, pad_right = _get_pad(W, multiple)
    H_out = H + pad_top + pad_bot
    W_out = W + pad_left + pad_right

    if pad_top == 0 and pad_bot == 0 and pad_left == 0 and pad_right == 0:
        return x  # already a multiple; padding is a no-op

    P = N * C
    itemsize = jnp.dtype(x.dtype).itemsize
    sublane = max(8, 32 // max(1, itemsize))       # 8 f32, 16 bf16, 32 int8
    lane_in = H * W
    lane_out = H_out * W_out
    lane_in_pad = _round_up(lane_in, 128)          # physical lane width
    lane_out_pad = _round_up(lane_out, 128)

    # --- generation-aware VMEM budget for the double-buffered in+out tiles.
    vmem_cap = _vmem_capacity_bytes()
    tile_budget = min(int(vmem_cap * 0.45), 96 << 20)

    # Physical (padded) double-buffered bytes per plane row of the tile.
    per_plane_bytes = 2 * (lane_in_pad + lane_out_pad) * itemsize

    if per_plane_bytes * sublane > tile_budget or H > 2048:
        # TODO(synk): add an H-chunked (plane, row-block) Pallas path for planes
        # that exceed the VMEM tile budget; fall back to XLA pad for those shapes.
        return jnp.pad(x, ((0, 0), (0, 0), (pad_top, pad_bot), (pad_left, pad_right)))

    # --- tile sizing from the physical footprint.
    tc = max(1, tile_budget // per_plane_bytes)
    # Keep >= 4 grid steps (>= 2 per v7x TensorCore) when P is large enough to
    # allow it with sublane-aligned blocks; else >= 2 steps; else one block.
    if P >= 4 * sublane:
        tc = min(tc, P // 4)
    elif P >= 2 * sublane:
        tc = min(tc, P // 2)
    tc = min(tc, P)
    if tc < P:
        tc = max(sublane, (tc // sublane) * sublane)  # sublane-aligned blocks
        tc = min(tc, P)
    grid = (pl.cdiv(P, tc),)

    phys_tile_bytes = 2 * _round_up(tc, sublane) * (lane_in_pad + lane_out_pad) * itemsize
    vmem_limit = int(min(max(phys_tile_bytes + (8 << 20), 32 << 20),
                         vmem_cap - (4 << 20)))

    xf = x.reshape(P, lane_in)
    kern = partial(_center_pad_flat_kernel,
                   H=H, W=W, W_out=W_out, pad_top=pad_top, pad_left=pad_left)

    out = pl.pallas_call(
        kern,
        out_shape=jax.ShapeDtypeStruct((P, lane_out), x.dtype),
        grid=grid,
        # Last dims equal the full (flattened) array dims -> no (8,128) issue
        # there; the plane axis is tiled in sublane multiples (or spans P).
        in_specs=[pl.BlockSpec((tc, lane_in), lambda i: (i, 0))],
        out_specs=pl.BlockSpec((tc, lane_out), lambda i: (i, 0)),
        compiler_params=pltpu.CompilerParams(
            dimension_semantics=("parallel",),
            vmem_limit_bytes=vmem_limit,
        ),
    )(xf)

    return out.reshape(N, C, H_out, W_out)


def _reference(x, multiple):
    _, _, H, W = x.shape
    pt, pb = _get_pad(H, multiple)
    pleft, pright = _get_pad(W, multiple)
    return jnp.pad(x, ((0, 0), (0, 0), (pt, pb), (pleft, pright)))


if __name__ == "__main__":
    multiple = 14

    # Case 1: the module's expected usage — NCHW, 2x4x16x16 f32 (P=8, one block).
    x1 = jax.random.normal(jax.random.PRNGKey(0), (2, 4, 16, 16), dtype=jnp.float32)
    y1 = jax.block_until_ready(center_padding(x1, multiple=multiple))
    y1_ref = _reference(x1, multiple)
    assert y1.shape == y1_ref.shape and y1.dtype == x1.dtype
    assert jnp.allclose(y1, y1_ref), "mismatch vs reference padding (case 1)"

    # Case 2: non-square spatial dims, P not a sublane multiple (full-P block).
    x2 = jax.random.normal(jax.random.PRNGKey(0), (3, 5, 10, 20), dtype=jnp.float32)
    y2 = jax.block_until_ready(center_padding(x2, multiple=multiple))
    y2_ref = _reference(x2, multiple)
    assert y2.shape == y2_ref.shape
    assert jnp.allclose(y2, y2_ref), "mismatch vs reference padding (case 2)"

    # Case 3: P=36 -> multi-step grid with a ragged last block (tc=8, 5 steps).
    x3 = jax.random.normal(jax.random.PRNGKey(0), (4, 9, 16, 16), dtype=jnp.float32)
    y3 = jax.block_until_ready(center_padding(x3, multiple=multiple))
    y3_ref = _reference(x3, multiple)
    assert y3.shape == y3_ref.shape
    assert jnp.allclose(y3, y3_ref), "mismatch vs reference padding (case 3)"

    print("KERNEL_OK")
</pallas_src>

<mosaic_0001>
module attributes {stable_mosaic.version = 11 : i64} {
  func.func @_center_pad_flat_kernel(%arg0: i32, %arg1: memref<8x256xf32, #tpu.memory_space<vmem>>, %arg2: memref<8x784xf32, #tpu.memory_space<vmem>>) attributes {dimension_semantics = [#tpu.dimension_semantics<parallel>], iteration_bounds = array<i64: 1>, scalar_prefetch = 0 : i64, scratch_operands = 0 : i64, tpu.core_type = #tpu.core_type<tc>, window_params = [{transform_indices = @transform_0, window_bounds = array<i64: 8, 256>}, {transform_indices = @transform_1, window_bounds = array<i64: 8, 784>}]} {
    %cst = arith.constant 0.000000e+00 : f32
    %0 = vector.broadcast %cst : f32 to vector<8x784xf32>
    %c0 = arith.constant 0 : index
    %c0_0 = arith.constant 0 : index
    %1 = vector.load %arg2[%c0, %c0_0] : memref<8x784xf32, #tpu.memory_space<vmem>>, vector<8x784xf32>
    tpu.vector_store %arg2[%c0, %c0_0], %0 {strides = array<i32>} : memref<8x784xf32, #tpu.memory_space<vmem>>, vector<8x784xf32>,
    %c0_1 = arith.constant 0 : index
    %c0_2 = arith.constant 0 : index
    %2 = vector.load %arg1[%c0_1, %c0_2] : memref<8x256xf32, #tpu.memory_space<vmem>>, vector<8x16xf32>
    %c0_3 = arith.constant 0 : index
    %c174 = arith.constant 174 : index
    %3 = vector.load %arg2[%c0_3, %c174] : memref<8x784xf32, #tpu.memory_space<vmem>>, vector<8x16xf32>
    tpu.vector_store %arg2[%c0_3, %c174], %2 {strides = array<i32>} : memref<8x784xf32, #tpu.memory_space<vmem>>, vector<8x16xf32>,
    %c0_4 = arith.constant 0 : index
    %c16 = arith.constant 16 : index
    %4 = vector.load %arg1[%c0_4, %c16] : memref<8x256xf32, #tpu.memory_space<vmem>>, vector<8x16xf32>
    %c0_5 = arith.constant 0 : index
    %c202 = arith.constant 202 : index
    %5 = vector.load %arg2[%c0_5, %c202] : memref<8x784xf32, #tpu.memory_space<vmem>>, vector<8x16xf32>
    tpu.vector_store %arg2[%c0_5, %c202], %4 {strides = array<i32>} : memref<8x784xf32, #tpu.memory_space<vmem>>, vector<8x16xf32>,
    %c0_6 = arith.constant 0 : index
    %c32 = arith.constant 32 : index
    %6 = vector.load %arg1[%c0_6, %c32] : memref<8x256xf32, #tpu.memory_space<vmem>>, vector<8x16xf32>
    %c0_7 = arith.constant 0 : index
    %c230 = arith.constant 230 : index
    %7 = vector.load %arg2[%c0_7, %c230] : memref<8x784xf32, #tpu.memory_space<vmem>>, vector<8x16xf32>
    tpu.vector_store %arg2[%c0_7, %c230], %6 {strides = array<i32>} : memref<8x784xf32, #tpu.memory_space<vmem>>, vector<8x16xf32>,
    %c0_8 = arith.constant 0 : index
    %c48 = arith.constant 48 : index
    %8 = vector.load %arg1[%c0_8, %c48] : memref<8x256xf32, #tpu.memory_space<vmem>>, vector<8x16xf32>
    %c0_9 = arith.constant 0 : index
    %c258 = arith.constant 258 : index
    %9 = vector.load %arg2[%c0_9, %c258] : memref<8x784xf32, #tpu.memory_space<vmem>>, vector<8x16xf32>
    tpu.vector_store %arg2[%c0_9, %c258], %8 {strides = array<i32>} : memref<8x784xf32, #tpu.memory_space<vmem>>, vector<8x16xf32>,
    %c0_10 = arith.constant 0 : index
    %c64 = arith.constant 64 : index
    %10 = vector.load %arg1[%c0_10, %c64] : memref<8x256xf32, #tpu.memory_space<vmem>>, vector<8x16xf32>
    %c0_11 = arith.constant 0 : index
    %c286 = arith.constant 286 : index
    %11 = vector.load %arg2[%c0_11, %c286] : memref<8x784xf32, #tpu.memory_space<vmem>>, vector<8x16xf32>
    tpu.vector_store %arg2[%c0_11, %c286], %10 {strides = array<i32>} : memref<8x784xf32, #tpu.memory_space<vmem>>, vector<8x16xf32>,
    %c0_12 = arith.constant 0 : index
    %c80 = arith.constant 80 : index
    %12 = vector.load %arg1[%c0_12, %c80] : memref<8x256xf32, #tpu.memory_space<vmem>>, vector<8x16xf32>
    %c0_13 = arith.constant 0 : index
    %c314 = arith.constant 314 : index
    %13 = vector.load %arg2[%c0_13, %c314] : memref<8x784xf32, #tpu.memory_space<vmem>>, vector<8x16xf32>
    tpu.vector_store %arg2[%c0_13, %c314], %12 {strides = array<i32>} : memref<8x784xf32, #tpu.memory_space<vmem>>, vector<8x16xf32>,
    %c0_14 = arith.constant 0 : index
    %c96 = arith.constant 96 : index
    %14 = vector.load %arg1[%c0_14, %c96] : memref<8x256xf32, #tpu.memory_space<vmem>>, vector<8x16xf32>
    %c0_15 = arith.constant 0 : index
    %c342 = arith.constant 342 : index
    %15 = vector.load %arg2[%c0_15, %c342] : memref<8x784xf32, #tpu.memory_space<vmem>>, vector<8x16xf32>
    tpu.vector_store %arg2[%c0_15, %c342], %14 {strides = array<i32>} : memref<8x784xf32, #tpu.memory_space<vmem>>, vector<8x16xf32>,
    %c0_16 = arith.constant 0 : index
    %c112 = arith.constant 112 : index
    %16 = vector.load %arg1[%c0_16, %c112] : memref<8x256xf32, #tpu.memory_space<vmem>>, vector<8x16xf32>
    %c0_17 = arith.constant 0 : index
    %c370 = arith.constant 370 : index
    %17 = vector.load %arg2[%c0_17, %c370] : memref<8x784xf32, #tpu.memory_space<vmem>>, vector<8x16xf32>
    tpu.vector_store %arg2[%c0_17, %c370], %16 {strides = array<i32>} : memref<8x784xf32, #tpu.memory_space<vmem>>, vector<8x16xf32>,
    %c0_18 = arith.constant 0 : index
    %c128 = arith.constant 128 : index
    %18 = vector.load %arg1[%c0_18, %c128] : memref<8x256xf32, #tpu.memory_space<vmem>>, vector<8x16xf32>
    %c0_19 = arith.constant 0 : index
    %c398 = arith.constant 398 : index
    %19 = vector.load %arg2[%c0_19, %c398] : memref<8x784xf32, #tpu.memory_space<vmem>>, vector<8x16xf32>
    tpu.vector_store %arg2[%c0_19, %c398], %18 {strides = array<i32>} : memref<8x784xf32, #tpu.memory_space<vmem>>, vector<8x16xf32>,
    %c0_20 = arith.constant 0 : index
    %c144 = arith.constant 144 : index
    %20 = vector.load %arg1[%c0_20, %c144] : memref<8x256xf32, #tpu.memory_space<vmem>>, vector<8x16xf32>
    %c0_21 = arith.constant 0 : index
    %c426 = arith.constant 426 : index
    %21 = vector.load %arg2[%c0_21, %c426] : memref<8x784xf32, #tpu.memory_space<vmem>>, vector<8x16xf32>
    tpu.vector_store %arg2[%c0_21, %c426], %20 {strides = array<i32>} : memref<8x784xf32, #tpu.memory_space<vmem>>, vector<8x16xf32>,
    %c0_22 = arith.constant 0 : index
    %c160 = arith.constant 160 : index
    %22 = vector.load %arg1[%c0_22, %c160] : memref<8x256xf32, #tpu.memory_space<vmem>>, vector<8x16xf32>
    %c0_23 = arith.constant 0 : index
    %c454 = arith.constant 454 : index
    %23 = vector.load %arg2[%c0_23, %c454] : memref<8x784xf32, #tpu.memory_space<vmem>>, vector<8x16xf32>
    tpu.vector_store %arg2[%c0_23, %c454], %22 {strides = array<i32>} : memref<8x784xf32, #tpu.memory_space<vmem>>, vector<8x16xf32>,
    %c0_24 = arith.constant 0 : index
    %c176 = arith.constant 176 : index
    %24 = vector.load %arg1[%c0_24, %c176] : memref<8x256xf32, #tpu.memory_space<vmem>>, vector<8x16xf32>
    %c0_25 = arith.constant 0 : index
    %c482 = arith.constant 482 : index
    %25 = vector.load %arg2[%c0_25, %c482] : memref<8x784xf32, #tpu.memory_space<vmem>>, vector<8x16xf32>
    tpu.vector_store %arg2[%c0_25, %c482], %24 {strides = array<i32>} : memref<8x784xf32, #tpu.memory_space<vmem>>, vector<8x16xf32>,
    %c0_26 = arith.constant 0 : index
    %c192 = arith.constant 192 : index
    %26 = vector.load %arg1[%c0_26, %c192] : memref<8x256xf32, #tpu.memory_space<vmem>>, vector<8x16xf32>
    %c0_27 = arith.constant 0 : index
    %c510 = arith.constant 510 : index
    %27 = vector.load %arg2[%c0_27, %c510] : memref<8x784xf32, #tpu.memory_space<vmem>>, vector<8x16xf32>
    tpu.vector_store %arg2[%c0_27, %c510], %26 {strides = array<i32>} : memref<8x784xf32, #tpu.memory_space<vmem>>, vector<8x16xf32>,
    %c0_28 = arith.constant 0 : index
    %c208 = arith.constant 208 : index
    %28 = vector.load %arg1[%c0_28, %c208] : memref<8x256xf32, #tpu.memory_space<vmem>>, vector<8x16xf32>
    %c0_29 = arith.constant 0 : index
    %c538 = arith.constant 538 : index
    %29 = vector.load %arg2[%c0_29, %c538] : memref<8x784xf32, #tpu.memory_space<vmem>>, vector<8x16xf32>
    tpu.vector_store %arg2[%c0_29, %c538], %28 {strides = array<i32>} : memref<8x784xf32, #tpu.memory_space<vmem>>, vector<8x16xf32>,
    %c0_30 = arith.constant 0 : index
    %c224 = arith.constant 224 : index
    %30 = vector.load %arg1[%c0_30, %c224] : memref<8x256xf32, #tpu.memory_space<vmem>>, vector<8x16xf32>
    %c0_31 = arith.constant 0 : index
    %c566 = arith.constant 566 : index
    %31 = vector.load %arg2[%c0_31, %c566] : memref<8x784xf32, #tpu.memory_space<vmem>>, vector<8x16xf32>
    tpu.vector_store %arg2[%c0_31, %c566], %30 {strides = array<i32>} : memref<8x784xf32, #tpu.memory_space<vmem>>, vector<8x16xf32>,
    %c0_32 = arith.constant 0 : index
    %c240 = arith.constant 240 : index
    %32 = vector.load %arg1[%c0_32, %c240] : memref<8x256xf32, #tpu.memory_space<vmem>>, vector<8x16xf32>
    %c0_33 = arith.constant 0 : index
    %c594 = arith.constant 594 : index
    %33 = vector.load %arg2[%c0_33, %c594] : memref<8x784xf32, #tpu.memory_space<vmem>>, vector<8x16xf32>
    tpu.vector_store %arg2[%c0_33, %c594], %32 {strides = array<i32>} : memref<8x784xf32, #tpu.memory_space<vmem>>, vector<8x16xf32>,
    return
  }
  func.func @transform_0(%arg0: i32) -> (i32, i32) {
    %c0_i32 = arith.constant 0 : i32
    %c0_i32_0 = arith.constant 0 : i32
    return %arg0, %c0_i32 : i32, i32
  }
  func.func @transform_1(%arg0: i32) -> (i32, i32) {
    %c0_i32 = arith.constant 0 : i32
    %c0_i32_0 = arith.constant 0 : i32
    return %arg0, %c0_i32 : i32, i32
  }
}

</mosaic_0001>

<bundles_post_ra>
// kernel: tpu_custom_call.1
= control target key start
LH: loop header
LB: loop body
LE: loop exit
PB: predicated region body
PF: predicated region fallthrough
CT: control target
= control target key end

     0   :  { %6 = vsyncpa [#allocation3], 0  ;;  %s280_s0 = inlined_call_operand.hbm [shape: f32[8,256], index: 0, kind: input, shape index: {}]   ;;  %s281_s1 = inlined_call_operand.hbm [shape: f32[8,784], index: 1, kind: output, shape index: {}]  }
   0x1   :  { %7 = vsyncpa [#allocation4], 0  ;;  %s227_s6 = smov [#allocation2]   ;;  %s179_s10 = scalar_lea.hbm %s280_s0, 256 }
   0x2   :  { %s14_s7 = sshll.u32 %s227_s6, 4  ;;  %p180_p0 = scmp.ne.s32.totalorder %s280_s0, %s179_s10  ;;  %s15_s7 = int_to_ptr.vmem [resolvable:$true] %s14_s7 }
   0x3   :  { %p183_p1 = scmp.lt.u32.totalorder %s179_s10, %s280_s0 }
   0x5   :  { %p185_p2 = pnand %p183_p1, %p180_p0 }
   0x7   :  { %188 = shalt.err (!%p185_p2)
}
   0x8   :  { %s189_s15 = scalar_lea.vmem %s15_s7, 256  ;;  %p194_p4 = scmp.lt.s32.totalorder %s15_s7, %s15_s7 }
   0x9   :  { %p190_p3 = scmp.ne.s32.totalorder %s15_s7, %s189_s15  ;;  %p195_p5 = scmp.lt.s32.totalorder %s189_s15, %s189_s15 }
   0xb   :  { %p196_p6 = por %p195_p5, %p194_p4 }
   0xd   :  { %p197_p7 = pnand %p196_p6, %p190_p3 }
   0xf   :  { %200 = shalt.err (!%p197_p7)
}
  0x10   :  { %17 = dma.hbm_to_vmem [thread:$0]  %s280_s0, 256, %s15_s7, [#allocation3]  }
  0x11   :  { %223 = dma.done.wait [#allocation3], 256  }
  0x12   :  { %224 = vsyncadd [#allocation3], 4294967040  ;;  %v228_v0 = vmov 0.0   ;;  %v87_v1 = vld [vmem:[#allocation2 + $0x8] sm:$0xff]  ;;  %v78_v2 = vld [vmem:[#allocation2] sm:$0xff]  ;;  %s229_s18 = smov 14  }
  0x13   :  { %24 = vst [vmem:[#allocation5 + $0x18] sm:$0xff] %v228_v0  ;;  %21 = vst [vmem:[#allocation5] sm:$0xff] %v228_v0  ;;  %89 = vrot.lane.b32.xlu1 %v87_v1, %s229_s18  ;;  %s230_s19 = smov 2   ;;  %s231_s20 = smov 94   ;;  %vm27_vm0 = vcmask 130048   ;;  %vm85_vm1 = vcmask 15360  }
  0x14   :  { %22 = vst [vmem:[#allocation5 + $0x8] sm:$0xff] %v228_v0  ;;  %23 = vst [vmem:[#allocation5 + $0x10] sm:$0xff] %v228_v0  ;;  %80 = vrot.lane.b32.xlu0 %v78_v2, %s230_s19  ;;  %s232_s21 = smov 82   ;;  %s233_s0 = smov 62   ;;  %vm92_vm2 = vcmask 244848   ;;  %vm55_vm3 = vcmask 146448  }
  0x15   :  { %25 = vst [vmem:[#allocation5 + $0x20] sm:$0xff] %v228_v0  ;;  %26 = vst [vmem:[#allocation5 + $0x28] sm:$0xff] %v228_v0  ;;  %s234_s22 = smov 26   ;;  %s235_s23 = smov 106   ;;  %vm62_vm4 = vcmask 376048   ;;  %vm122_vm5 = vcmask 113664  }
  0x16   :  { %s236_s24 = smov 46   ;;  %28 = vst.msk [vmem:[#allocation5 + $0x30] sm:$0xff] %vm27_vm0, %v228_v0  ;;  %s237_s25 = smov 74   ;;  %vm99_vm6 = vcmask 474448   ;;  %vm69_vm7 = vcmask 605648   ;;  %vm34_vm8 = vcmask 507248  }
  0x17   :  { %59 = vrot.lane.b32.xlu1 %v78_v2, %s231_s20  ;;  %s238_s26 = smov 38   ;;  %s239_s27 = smov 118   ;;  %vm129_vm9 = vcmask 343248   ;;  %vm106_vm10 = vcmask 704048   ;;  %vm76_vm11 = vcmask 835248   ;;  %vm41_vm12 = vcmask 736848  }
  0x18   :  { %52 = vrot.lane.b32.xlu0 %v78_v2, %s232_s21  ;;  %s240_s28 = smov 58   ;;  %s241_s29 = smov 86   ;;  %vm83_vm13 = vcmask 1048464   ;;  %vm136_vm14 = vcmask 572848   ;;  %vm113_vm15 = vcmask 933648   ;;  %vm120_vm0 = vcmask 1048560  }
  0x19   :  { %s242_s30 = smov 50   ;;  %s243_s2 = smov 98  }
  0x1a   :  { %s244_s3 = smov 70   ;;  %s245_s4 = smov [#allocation5]  }
  0x1b   :  { %117 = vrot.lane.b32.xlu1 %v87_v1, %s233_s0  ;;  %s151_s5 = sshll.u32 %s245_s4, 4  ;;  %s152_s5 = int_to_ptr.vmem [resolvable:$true] %s151_s5 }
  0x1c   :  { %96 = vrot.lane.b32.xlu0 %v87_v1, %s234_s22  ;;  %s201_s6 = scalar_lea.vmem %s152_s5, 896  ;;  %p206_p9 = scmp.lt.s32.totalorder %s152_s5, %s152_s5 }
  0x1d   :  { %p202_p8 = scmp.ne.s32.totalorder %s152_s5, %s201_s6  ;;  %p207_p10 = scmp.lt.s32.totalorder %s201_s6, %s201_s6 }
  0x1f   :  { %66 = vrot.lane.b32.xlu1 %v78_v2, %s235_s23  ;;  %p208_p11 = por %p207_p10, %p206_p9 }
  0x20   :  { %31 = vrot.lane.b32.xlu0 %v78_v2, %s236_s24 }
  0x21   :  { %p209_p12 = pnand %p208_p11, %p202_p8 }
  0x23   :  { %126 = vrot.lane.b32.xlu1 %v87_v1, %s237_s25 }
  0x24   :  { %103 = vrot.lane.b32.xlu0 %v87_v1, %s238_s26 }
  0x27   :  { %73 = vrot.lane.b32.xlu1 %v78_v2, %s239_s27 }
  0x28   :  { %38 = vrot.lane.b32.xlu0 %v78_v2, %s240_s28 }
  0x2b   :  { %133 = vrot.lane.b32.xlu1 %v87_v1, %s241_s29 }
  0x2c   :  { %110 = vrot.lane.b32.xlu0 %v87_v1, %s242_s30 }
  0x2f   :  { %140 = vrot.lane.b32.xlu1 %v87_v1, %s243_s2 }
  0x30   :  { %45 = vrot.lane.b32.xlu0 %v78_v2, %s244_s3 }
  0x85   :  { %v90_v3 = vpop.permute.xlu1 %89 }
  0x86   :  { %v81_v4 = vpop.permute.xlu0 %80 }
  0x87   :  { %86 = vst.msk [vmem:[#allocation5 + $0x18] sm:$0xff] %vm85_vm1, %v81_v4  ;;  %vm143_vm1 = vcmask 802448  }
  0x88   :  { %93 = vst.msk [vmem:[#allocation5 + $0x18] sm:$0xff] %vm92_vm2, %v90_v3  ;;  %vm48_vm2 = vcmask 966448  }
  0x89   :  { %v60_v5 = vpop.permute.xlu1 %59 }
  0x8a   :  { %v53_v6 = vpop.permute.xlu0 %52 }
  0x8b   :  { %56 = vst.msk [vmem:[#allocation5 + $0x10] sm:$0xff] %vm55_vm3, %v53_v6 }
  0x8c   :  { %63 = vst.msk [vmem:[#allocation5 + $0x10] sm:$0xff] %vm62_vm4, %v60_v5 }
  0x8d   :  { %v118_v7 = vpop.permute.xlu1 %117 }
  0x8e   :  { %v97_v8 = vpop.permute.xlu0 %96  ;;  %123 = vst.msk [vmem:[#allocation5 + $0x20] sm:$0xff] %vm122_vm5, %v118_v7 }
  0x8f   :  { %100 = vst.msk [vmem:[#allocation5 + $0x18] sm:$0xff] %vm99_vm6, %v97_v8 }
  0x91   :  { %v67_v9 = vpop.permute.xlu1 %66 }
  0x92   :  { %v32_v10 = vpop.permute.xlu0 %31  ;;  %70 = vst.msk [vmem:[#allocation5 + $0x10] sm:$0xff] %vm69_vm7, %v67_v9 }
  0x93   :  { %35 = vst.msk [vmem:[#allocation5 + $0x8] sm:$0xff] %vm34_vm8, %v32_v10 }
  0x95   :  { %v127_v11 = vpop.permute.xlu1 %126 }
  0x96   :  { %v104_v12 = vpop.permute.xlu0 %103  ;;  %130 = vst.msk [vmem:[#allocation5 + $0x20] sm:$0xff] %vm129_vm9, %v127_v11 }
  0x97   :  { %107 = vst.msk [vmem:[#allocation5 + $0x18] sm:$0xff] %vm106_vm10, %v104_v12 }
  0x99   :  { %v74_v13 = vpop.permute.xlu1 %73 }
  0x9a   :  { %v39_v14 = vpop.permute.xlu0 %38  ;;  %77 = vst.msk [vmem:[#allocation5 + $0x10] sm:$0xff] %vm76_vm11, %v74_v13 }
  0x9b   :  { %42 = vst.msk [vmem:[#allocation5 + $0x8] sm:$0xff] %vm41_vm12, %v39_v14 }
  0x9c   :  { %84 = vst.msk [vmem:[#allocation5 + $0x10] sm:$0xff] %vm83_vm13, %v81_v4 }
  0x9d   :  { %v134_v15 = vpop.permute.xlu1 %133 }
  0x9e   :  { %v111_v16 = vpop.permute.xlu0 %110  ;;  %137 = vst.msk [vmem:[#allocation5 + $0x20] sm:$0xff] %vm136_vm14, %v134_v15 }
  0x9f   :  { %114 = vst.msk [vmem:[#allocation5 + $0x18] sm:$0xff] %vm113_vm15, %v111_v16 }
  0xa0   :  { %121 = vst.msk [vmem:[#allocation5 + $0x18] sm:$0xff] %vm120_vm0, %v118_v7 }
  0xa1   :  { %v141_v17 = vpop.permute.xlu1 %140 }
  0xa2   :  { %v46_v18 = vpop.permute.xlu0 %45  ;;  %144 = vst.msk [vmem:[#allocation5 + $0x20] sm:$0xff] %vm143_vm1, %v141_v17 }
  0xa3   :  { %49 = vst.msk [vmem:[#allocation5 + $0x8] sm:$0xff] %vm48_vm2, %v46_v18 }
  0xa4   :  { %212 = shalt.err (!%p209_p12)
}
  0xa5   :  { %s213_s9 = scalar_lea.hbm %s281_s1, 896 }
  0xa6   :  { %p214_p13 = scmp.ne.s32.totalorder %s281_s1, %s213_s9  ;;  %p217_p0 = scmp.lt.u32.totalorder %s213_s9, %s281_s1 }
  0xa8   :  { %p219_p1 = pnand %p217_p0, %p214_p13 }
  0xaa   :  { %222 = shalt.err (!%p219_p1)
}
  0xab   :  { %154 = dma.vmem_to_hbm [thread:$0]  %s152_s5, 896, %s281_s1, [#allocation4]  }
  0xac   :  { %225 = dma.done.wait [#allocation4], 896  }
  0xad   :  { %226 = vsyncadd [#allocation4], 4294966400 }
  0xae   :  { %158 = vsyncpa [#allocation3], 1 }
  0xaf   :  { %159 = vsyncpa [#allocation4], 1 }

</bundles_post_ra>
